<compile_context>
chip_gen: v7x
topology: tpu7x:2x2x1
jax: 0.10.0
libtpu: 0.0.40
codegen_flags: <defaults>
</compile_context>

<pallas_src>
import functools
import math

import numpy as np
import jax
import jax.numpy as jnp
from jax import lax
from jax.experimental import pallas as pl
from jax.experimental.pallas import tpu as pltpu


# ---------------------------------------------------------------------------
# Fused Pallas kernel (one image per grid step)
# ---------------------------------------------------------------------------
def _dis_block_kernel(x_ref, w1_ref, b1_ref, w2_ref, sh_ref, wsc_ref,
                      bsum_ref, px_ref, py_ref, o_ref, *, fold_rows):
    f32 = jnp.float32
    x2 = x_ref[0]                      # (H, W*Cin), lane-dense activation slab
    s_dn = sh_ref[0]                   # (H, H): out[y] = in[y-1]  (dy=0 tap)
    s_up = sh_ref[1]                   # (H, H): out[y] = in[y+1]  (dy=2 tap)

    def conv3x3(inp, w3_ref):
        # inp: (H, W*Ci); w3_ref: (3, W*Ci, W*Co) banded weights with the x
        # zero-padding baked in.  y-padding is realized by the shift matmuls.
        a0 = jnp.dot(inp, w3_ref[0], preferred_element_type=f32)
        a1 = jnp.dot(inp, w3_ref[1], preferred_element_type=f32)
        a2 = jnp.dot(inp, w3_ref[2], preferred_element_type=f32)
        out = a1
        out = out + jnp.dot(s_dn, a0, preferred_element_type=f32)
        out = out + jnp.dot(s_up, a2, preferred_element_type=f32)
        return out

    # residual path: c2(relu(c1(relu(x))))
    h = conv3x3(jnp.maximum(x2, 0.0), w1_ref) + b1_ref[...]    # (H, W*Hch)
    res = conv3x3(jnp.maximum(h, 0.0), w2_ref)                 # (H, W*Cout)

    # shortcut path: 1x1 conv (block-diag identity when not learnable) — no relu
    sc = jnp.dot(x2, wsc_ref[...], preferred_element_type=f32)

    # b2 (+ b_sc) folded into one broadcast add
    s = res + sc + bsum_ref[...]                               # (H, W*Cout)

    # avg_pool2d(sc) + avg_pool2d(res) == avg_pool2d(sc + res): Px averages
    # x-pairs along lanes, Py averages y-pairs along rows.  When downsampling
    # and Hout is even, two pooled rows are packed per output row so the
    # output block is 128 lanes wide (Px comes pre-embedded into left/right
    # halves — px_ref[0]/px_ref[1]).  Identity matrices when not downsampling.
    py = py_ref[...]
    if fold_rows:
        r = py.shape[0] // 2
        o = jnp.dot(py[0:r, :], jnp.dot(s, px_ref[0], preferred_element_type=f32),
                    preferred_element_type=f32)
        o = o + jnp.dot(py[r:, :], jnp.dot(s, px_ref[1], preferred_element_type=f32),
                        preferred_element_type=f32)
    else:
        o = jnp.dot(py, jnp.dot(s, px_ref[0], preferred_element_type=f32),
                    preferred_element_type=f32)
    o_ref[0] = o.astype(o_ref.dtype)


# ---------------------------------------------------------------------------
# Host-side one-time operand packing (weights are tiny; done with numpy)
# ---------------------------------------------------------------------------
def _np_w(x):
    return np.asarray(jax.device_get(x), dtype=np.float32)


def _pack_conv3x3_banded(w_oihw, width):
    """(Cout,Cin,3,3) -> (3, width*Cin, width*Cout) banded matmul weights.

    big[dy][xin*Cin+ci, xo*Cout+co] = w[co, ci, dy, xin-xo+1]; taps that fall
    into the x zero-padding are simply omitted (they contribute 0)."""
    wnp = _np_w(w_oihw)
    cout, cin, kh, kw = wnp.shape
    big = np.zeros((kh, width * cin, width * cout), np.float32)
    for dy in range(kh):
        for xo in range(width):
            for dx in range(kw):
                xin = xo + dx - (kw // 2)
                if 0 <= xin < width:
                    big[dy, xin * cin:(xin + 1) * cin,
                        xo * cout:(xo + 1) * cout] = wnp[:, :, dy, dx].T
    return jnp.asarray(big)


def _pack_conv1x1_blockdiag(w_oihw, width):
    wnp = _np_w(w_oihw)[:, :, 0, 0].T                # (Cin, Cout)
    cin, cout = wnp.shape
    big = np.zeros((width * cin, width * cout), np.float32)
    for x in range(width):
        big[x * cin:(x + 1) * cin, x * cout:(x + 1) * cout] = wnp
    return jnp.asarray(big)


def _shift_matrices(height):
    s = np.zeros((2, height, height), np.float32)
    for y in range(1, height):
        s[0, y, y - 1] = 1.0                          # shift down (dy=0 tap)
    for y in range(height - 1):
        s[1, y, y + 1] = 1.0                          # shift up   (dy=2 tap)
    return jnp.asarray(s)


def _pool_x_matrices(width, channels, fold):
    wout = width // 2
    px = np.zeros((width * channels, wout * channels), np.float32)
    for x in range(width):
        for c in range(channels):
            px[x * channels + c, (x // 2) * channels + c] = 0.5
    if fold:   # embed into left / right lane halves of a 2*Wout*C wide output
        big = np.zeros((2, width * channels, 2 * wout * channels), np.float32)
        big[0, :, :wout * channels] = px
        big[1, :, wout * channels:] = px
    else:
        big = px[None]
    return jnp.asarray(big)


def _pool_y_matrix(height, fold):
    hout = height // 2
    if fold:
        r = hout // 2
        py = np.zeros((2 * r, height), np.float32)
        for i in range(r):
            py[i, 4 * i] = py[i, 4 * i + 1] = 0.5              # pooled row 2i
            py[r + i, 4 * i + 2] = py[r + i, 4 * i + 3] = 0.5  # pooled row 2i+1
    else:
        py = np.zeros((hout, height), np.float32)
        for yo in range(hout):
            py[yo, 2 * yo] = py[yo, 2 * yo + 1] = 0.5
    return jnp.asarray(py)


def pack_dis_block(params, *, height, width, downsample, learnable_sc):
    """One-time repacking of the (spectrally normalized) weights into the
    banded / block-diagonal / pooling matrices consumed by the fused kernel."""
    w1, b1, w2, b2 = params["w1"], params["b1"], params["w2"], params["b2"]
    hch, cin = int(w1.shape[0]), int(w1.shape[1])
    cout = int(w2.shape[0])
    assert int(w1.shape[2]) == 3 and int(w2.shape[2]) == 3, "assumes ksize=3, pad=1"

    packed = {
        "w1": _pack_conv3x3_banded(w1, width),                # (3, W*Cin, W*Hch)
        "b1": jnp.tile(jnp.asarray(b1, jnp.float32), width)[None, :],
        "w2": _pack_conv3x3_banded(w2, width),                # (3, W*Hch, W*Cout)
        "sh": _shift_matrices(height),                        # (2, H, H)
    }
    if learnable_sc:
        packed["wsc"] = _pack_conv1x1_blockdiag(params["wsc"], width)
        bsum = jnp.asarray(b2, jnp.float32) + jnp.asarray(params["bsc"], jnp.float32)
    else:
        assert cin == cout
        packed["wsc"] = jnp.asarray(np.eye(width * cin, dtype=np.float32))
        bsum = jnp.asarray(b2, jnp.float32)
    packed["bsum"] = jnp.tile(bsum, width)[None, :]           # (1, W*Cout)

    if downsample:
        hout, wout = height // 2, width // 2
        fold = (hout % 2 == 0)
        packed["px"] = _pool_x_matrices(width, cout, fold)
        packed["py"] = _pool_y_matrix(height, fold)
    else:
        hout, wout = height, width
        fold = False
        packed["px"] = jnp.asarray(np.eye(width * cout, dtype=np.float32))[None]
        packed["py"] = jnp.asarray(np.eye(height, dtype=np.float32))

    meta = dict(height=height, width=width, cin=cin, hch=hch, cout=cout,
                hout=hout, wout=wout, fold=fold)
    return packed, meta


# ---------------------------------------------------------------------------
# Forward wrapper: one pallas_call for the whole block
# ---------------------------------------------------------------------------
def dis_block_forward(x_nhwc, packed, meta):
    n, h, w, cin = x_nhwc.shape
    assert (h, w, cin) == (meta["height"], meta["width"], meta["cin"])
    hch, cout = meta["hch"], meta["cout"]
    hout, wout, fold = meta["hout"], meta["wout"], meta["fold"]

    x2 = x_nhwc.reshape(n, h, w * cin).astype(jnp.float32)    # free reshape
    out_lanes = int(packed["px"].shape[2])
    out_rows = int(packed["py"].shape[0]) // (2 if fold else 1)

    # advisory cost hint for XLA scheduling
    k_in, k_h, k_out = w * cin, w * hch, w * cout
    flops = 2 * n * (3 * h * k_in * k_h + 3 * h * k_h * k_out
                     + 2 * h * h * k_h + 2 * h * h * k_out
                     + h * k_in * k_out
                     + (2 if fold else 1) * h * k_out * out_lanes
                     + (2 if fold else 1) * out_rows * h * out_lanes)
    bytes_accessed = 4 * (int(x2.size) + n * out_rows * out_lanes
                          + sum(int(packed[k].size) for k in
                                ("w1", "b1", "w2", "sh", "wsc", "bsum", "px", "py")))

    const2 = lambda i: (0, 0)
    const3 = lambda i: (0, 0, 0)
    out = pl.pallas_call(
        functools.partial(_dis_block_kernel, fold_rows=fold),
        out_shape=jax.ShapeDtypeStruct((n, out_rows, out_lanes), jnp.float32),
        grid_spec=pltpu.PrefetchScalarGridSpec(
            num_scalar_prefetch=0,
            grid=(n,),
            in_specs=[
                pl.BlockSpec((1, h, w * cin), lambda i: (i, 0, 0)),
                pl.BlockSpec(tuple(packed["w1"].shape), const3),
                pl.BlockSpec(tuple(packed["b1"].shape), const2),
                pl.BlockSpec(tuple(packed["w2"].shape), const3),
                pl.BlockSpec(tuple(packed["sh"].shape), const3),
                pl.BlockSpec(tuple(packed["wsc"].shape), const2),
                pl.BlockSpec(tuple(packed["bsum"].shape), const2),
                pl.BlockSpec(tuple(packed["px"].shape), const3),
                pl.BlockSpec(tuple(packed["py"].shape), const2),
            ],
            out_specs=pl.BlockSpec((1, out_rows, out_lanes), lambda i: (i, 0, 0)),
        ),
        compiler_params=pltpu.CompilerParams(
            dimension_semantics=("parallel",)),
        cost_estimate=pl.CostEstimate(flops=int(flops), transcendentals=0,
                                      bytes_accessed=int(bytes_accessed)),
    )(x2, packed["w1"], packed["b1"], packed["w2"], packed["sh"],
      packed["wsc"], packed["bsum"], packed["px"], packed["py"])

    return out.reshape(n, hout, wout, cout)


# ---------------------------------------------------------------------------
# Deterministic parameter initialization (shapes from _DisBlock.__init__)
# ---------------------------------------------------------------------------
def _xavier_uniform(key, shape, gain):
    o, i, kh, kw = shape
    fan_in, fan_out = i * kh * kw, o * kh * kw
    bound = gain * math.sqrt(6.0 / (fan_in + fan_out))
    return jax.random.uniform(key, shape, jnp.float32, -bound, bound)


def _spectral_normalize(w, key, n_iter=50, eps=1e-12):
    o = w.shape[0]
    wm = w.reshape(o, -1)
    u = jax.random.normal(key, (o,), jnp.float32)
    u = u / (jnp.linalg.norm(u) + eps)
    v = None
    for _ in range(n_iter):
        v = wm.T @ u
        v = v / (jnp.linalg.norm(v) + eps)
        u = wm @ v
        u = u / (jnp.linalg.norm(u) + eps)
    sigma = u @ (wm @ v)
    return w / sigma


def make_params(key, in_ch, out_ch, ksize):
    h_ch = in_ch  # module default (h_ch=None -> h_ch = in_ch)
    ks = jax.random.split(key, 9)
    w1 = _xavier_uniform(ks[0], (h_ch, in_ch, ksize, ksize), math.sqrt(2.0))
    w2 = _xavier_uniform(ks[1], (out_ch, h_ch, ksize, ksize), math.sqrt(2.0))
    wsc = _xavier_uniform(ks[2], (out_ch, in_ch, 1, 1), 1.0)
    w1 = _spectral_normalize(w1, ks[3])
    w2 = _spectral_normalize(w2, ks[4])
    wsc = _spectral_normalize(wsc, ks[5])

    def bias(k, shape, fan_in):
        bnd = 1.0 / math.sqrt(fan_in)
        return jax.random.uniform(k, shape, jnp.float32, -bnd, bnd)

    b1 = bias(ks[6], (h_ch,), in_ch * ksize * ksize)
    b2 = bias(ks[7], (out_ch,), h_ch * ksize * ksize)
    bsc = bias(ks[8], (out_ch,), in_ch)
    return dict(w1=w1, b1=b1, w2=w2, b2=b2, wsc=wsc, bsc=bsc)


# ---------------------------------------------------------------------------
# Pure-JAX reference (for correctness check)
# ---------------------------------------------------------------------------
def ref_forward(x_nhwc, params, *, downsample, learnable_sc):
    dn = ("NHWC", "OIHW", "NHWC")

    def conv(x, w, b, pad):
        y = lax.conv_general_dilated(x, w, (1, 1), [(pad, pad), (pad, pad)],
                                     dimension_numbers=dn)
        return y + b[None, None, None, :]

    def pool(x):
        n, h, w, c = x.shape
        return x.reshape(n, h // 2, 2, w // 2, 2, c).mean(axis=(2, 4))

    hid = conv(jax.nn.relu(x_nhwc), params["w1"], params["b1"], 1)
    res = conv(jax.nn.relu(hid), params["w2"], params["b2"], 1)
    if downsample:
        res = pool(res)
    sc = conv(x_nhwc, params["wsc"], params["bsc"], 0) if learnable_sc else x_nhwc
    if downsample:
        sc = pool(sc)
    return sc + res


if __name__ == "__main__":
    key = jax.random.PRNGKey(0)
    kx, kp = jax.random.split(key)

    # _DisBlock(in_ch=4, out_ch=8, ksize=3, pad=1, downsample=True)
    n, in_ch, out_ch, s = 2, 4, 8, 16
    downsample = True
    learnable_sc = (in_ch != out_ch) or downsample

    x_nchw = jax.random.normal(kx, (n, in_ch, s, s), jnp.float32)  # PyTorch NCHW
    x_nhwc = jnp.transpose(x_nchw, (0, 2, 3, 1))                   # kernel layout

    params = make_params(kp, in_ch, out_ch, ksize=3)
    packed, meta = pack_dis_block(params, height=s, width=s,
                                  downsample=downsample,
                                  learnable_sc=learnable_sc)

    out_nhwc = dis_block_forward(x_nhwc, packed, meta)
    out_nhwc = jax.block_until_ready(out_nhwc)
    out_nchw = jnp.transpose(out_nhwc, (0, 3, 1, 2))

    ref_nchw = jnp.transpose(
        ref_forward(x_nhwc, params, downsample=downsample,
                    learnable_sc=learnable_sc),
        (0, 3, 1, 2))

    assert out_nchw.shape == (n, out_ch, s // 2, s // 2), out_nchw.shape
    err = float(jnp.max(jnp.abs(out_nchw - ref_nchw)))
    assert jnp.allclose(out_nchw, ref_nchw, atol=2e-3, rtol=2e-3), err
    print("KERNEL_OK")
</pallas_src>

<mosaic_0001>
module attributes {stable_mosaic.version = 11 : i64} {
  func.func @_dis_block_kernel(%arg0: i32, %arg1: memref<1x16x64xf32, #tpu.memory_space<vmem>>, %arg2: memref<3x64x64xf32, #tpu.memory_space<vmem>>, %arg3: memref<1x64xf32, #tpu.memory_space<vmem>>, %arg4: memref<3x64x128xf32, #tpu.memory_space<vmem>>, %arg5: memref<2x16x16xf32, #tpu.memory_space<vmem>>, %arg6: memref<64x128xf32, #tpu.memory_space<vmem>>, %arg7: memref<1x128xf32, #tpu.memory_space<vmem>>, %arg8: memref<2x128x128xf32, #tpu.memory_space<vmem>>, %arg9: memref<8x16xf32, #tpu.memory_space<vmem>>, %arg10: memref<1x4x128xf32, #tpu.memory_space<vmem>>) attributes {dimension_semantics = [#tpu.dimension_semantics<parallel>], iteration_bounds = array<i64: 2>, scalar_prefetch = 0 : i64, scratch_operands = 0 : i64, tpu.core_type = #tpu.core_type<tc>, window_params = [{transform_indices = @transform_0, window_bounds = array<i64: 1, 16, 64>}, {pipeline_mode = #tpu.pipeline_mode<synchronous>, transform_indices = @transform_1, window_bounds = array<i64: 3, 64, 64>}, {pipeline_mode = #tpu.pipeline_mode<synchronous>, transform_indices = @transform_2, window_bounds = array<i64: 1, 64>}, {pipeline_mode = #tpu.pipeline_mode<synchronous>, transform_indices = @transform_3, window_bounds = array<i64: 3, 64, 128>}, {pipeline_mode = #tpu.pipeline_mode<synchronous>, transform_indices = @transform_4, window_bounds = array<i64: 2, 16, 16>}, {pipeline_mode = #tpu.pipeline_mode<synchronous>, transform_indices = @transform_5, window_bounds = array<i64: 64, 128>}, {pipeline_mode = #tpu.pipeline_mode<synchronous>, transform_indices = @transform_6, window_bounds = array<i64: 1, 128>}, {pipeline_mode = #tpu.pipeline_mode<synchronous>, transform_indices = @transform_7, window_bounds = array<i64: 2, 128, 128>}, {pipeline_mode = #tpu.pipeline_mode<synchronous>, transform_indices = @transform_8, window_bounds = array<i64: 8, 16>}, {transform_indices = @transform_9, window_bounds = array<i64: 1, 4, 128>}]} {
    %c0 = arith.constant 0 : index
    %c0_0 = arith.constant 0 : index
    %c0_1 = arith.constant 0 : index
    %0 = vector.load %arg1[%c0, %c0_0, %c0_1] : memref<1x16x64xf32, #tpu.memory_space<vmem>>, vector<1x16x64xf32>
    %1 = vector.shape_cast %0 : vector<1x16x64xf32> to vector<16x64xf32>
    %c0_2 = arith.constant 0 : index
    %c0_3 = arith.constant 0 : index
    %c0_4 = arith.constant 0 : index
    %2 = vector.load %arg5[%c0_2, %c0_3, %c0_4] : memref<2x16x16xf32, #tpu.memory_space<vmem>>, vector<1x16x16xf32>
    %3 = vector.shape_cast %2 : vector<1x16x16xf32> to vector<16x16xf32>
    %c1 = arith.constant 1 : index
    %c0_5 = arith.constant 0 : index
    %c0_6 = arith.constant 0 : index
    %4 = vector.load %arg5[%c1, %c0_5, %c0_6] : memref<2x16x16xf32, #tpu.memory_space<vmem>>, vector<1x16x16xf32>
    %5 = vector.shape_cast %4 : vector<1x16x16xf32> to vector<16x16xf32>
    %cst = arith.constant 0.000000e+00 : f32
    %6 = vector.broadcast %cst : f32 to vector<16x64xf32>
    %7 = arith.maximumf %1, %6 : vector<16x64xf32>
    %c0_7 = arith.constant 0 : index
    %c0_8 = arith.constant 0 : index
    %c0_9 = arith.constant 0 : index
    %8 = vector.load %arg2[%c0_7, %c0_8, %c0_9] : memref<3x64x64xf32, #tpu.memory_space<vmem>>, vector<1x64x64xf32>
    %9 = vector.shape_cast %8 : vector<1x64x64xf32> to vector<64x64xf32>
    %cst_10 = arith.constant dense<0.000000e+00> : vector<16x64xf32>
    %10 = tpu.matmul %7, %9, %cst_10 {dimension_numbers = #tpu.dot_dimension_numbers<[1], [0], [0], [1], [0, 0, 1, 1], [], []>} : vector<16x64xf32>, vector<64x64xf32>, vector<16x64xf32> -> vector<16x64xf32>
    %c1_11 = arith.constant 1 : index
    %c0_12 = arith.constant 0 : index
    %c0_13 = arith.constant 0 : index
    %11 = vector.load %arg2[%c1_11, %c0_12, %c0_13] : memref<3x64x64xf32, #tpu.memory_space<vmem>>, vector<1x64x64xf32>
    %12 = vector.shape_cast %11 : vector<1x64x64xf32> to vector<64x64xf32>
    %cst_14 = arith.constant dense<0.000000e+00> : vector<16x64xf32>
    %13 = tpu.matmul %7, %12, %cst_14 {dimension_numbers = #tpu.dot_dimension_numbers<[1], [0], [0], [1], [0, 0, 1, 1], [], []>} : vector<16x64xf32>, vector<64x64xf32>, vector<16x64xf32> -> vector<16x64xf32>
    %c2 = arith.constant 2 : index
    %c0_15 = arith.constant 0 : index
    %c0_16 = arith.constant 0 : index
    %14 = vector.load %arg2[%c2, %c0_15, %c0_16] : memref<3x64x64xf32, #tpu.memory_space<vmem>>, vector<1x64x64xf32>
    %15 = vector.shape_cast %14 : vector<1x64x64xf32> to vector<64x64xf32>
    %cst_17 = arith.constant dense<0.000000e+00> : vector<16x64xf32>
    %16 = tpu.matmul %7, %15, %cst_17 {dimension_numbers = #tpu.dot_dimension_numbers<[1], [0], [0], [1], [0, 0, 1, 1], [], []>} : vector<16x64xf32>, vector<64x64xf32>, vector<16x64xf32> -> vector<16x64xf32>
    %cst_18 = arith.constant dense<0.000000e+00> : vector<16x64xf32>
    %17 = tpu.matmul %3, %10, %cst_18 {dimension_numbers = #tpu.dot_dimension_numbers<[1], [0], [0], [1], [0, 0, 1, 1], [], []>} : vector<16x16xf32>, vector<16x64xf32>, vector<16x64xf32> -> vector<16x64xf32>
    %18 = arith.addf %13, %17 : vector<16x64xf32>
    %cst_19 = arith.constant dense<0.000000e+00> : vector<16x64xf32>
    %19 = tpu.matmul %5, %16, %cst_19 {dimension_numbers = #tpu.dot_dimension_numbers<[1], [0], [0], [1], [0, 0, 1, 1], [], []>} : vector<16x16xf32>, vector<16x64xf32>, vector<16x64xf32> -> vector<16x64xf32>
    %20 = arith.addf %18, %19 : vector<16x64xf32>
    %c0_20 = arith.constant 0 : index
    %c0_21 = arith.constant 0 : index
    %21 = vector.load %arg3[%c0_20, %c0_21] : memref<1x64xf32, #tpu.memory_space<vmem>>, vector<1x64xf32>
    %22 = vector.broadcast %21 : vector<1x64xf32> to vector<16x64xf32>
    %23 = arith.addf %20, %22 : vector<16x64xf32>
    %cst_22 = arith.constant 0.000000e+00 : f32
    %24 = vector.broadcast %cst_22 : f32 to vector<16x64xf32>
    %25 = arith.maximumf %23, %24 : vector<16x64xf32>
    %c0_23 = arith.constant 0 : index
    %c0_24 = arith.constant 0 : index
    %c0_25 = arith.constant 0 : index
    %26 = vector.load %arg4[%c0_23, %c0_24, %c0_25] : memref<3x64x128xf32, #tpu.memory_space<vmem>>, vector<1x64x128xf32>
    %27 = vector.shape_cast %26 : vector<1x64x128xf32> to vector<64x128xf32>
    %cst_26 = arith.constant dense<0.000000e+00> : vector<16x128xf32>
    %28 = tpu.matmul %25, %27, %cst_26 {dimension_numbers = #tpu.dot_dimension_numbers<[1], [0], [0], [1], [0, 0, 1, 1], [], []>} : vector<16x64xf32>, vector<64x128xf32>, vector<16x128xf32> -> vector<16x128xf32>
    %c1_27 = arith.constant 1 : index
    %c0_28 = arith.constant 0 : index
    %c0_29 = arith.constant 0 : index
    %29 = vector.load %arg4[%c1_27, %c0_28, %c0_29] : memref<3x64x128xf32, #tpu.memory_space<vmem>>, vector<1x64x128xf32>
    %30 = vector.shape_cast %29 : vector<1x64x128xf32> to vector<64x128xf32>
    %cst_30 = arith.constant dense<0.000000e+00> : vector<16x128xf32>
    %31 = tpu.matmul %25, %30, %cst_30 {dimension_numbers = #tpu.dot_dimension_numbers<[1], [0], [0], [1], [0, 0, 1, 1], [], []>} : vector<16x64xf32>, vector<64x128xf32>, vector<16x128xf32> -> vector<16x128xf32>
    %c2_31 = arith.constant 2 : index
    %c0_32 = arith.constant 0 : index
    %c0_33 = arith.constant 0 : index
    %32 = vector.load %arg4[%c2_31, %c0_32, %c0_33] : memref<3x64x128xf32, #tpu.memory_space<vmem>>, vector<1x64x128xf32>
    %33 = vector.shape_cast %32 : vector<1x64x128xf32> to vector<64x128xf32>
    %cst_34 = arith.constant dense<0.000000e+00> : vector<16x128xf32>
    %34 = tpu.matmul %25, %33, %cst_34 {dimension_numbers = #tpu.dot_dimension_numbers<[1], [0], [0], [1], [0, 0, 1, 1], [], []>} : vector<16x64xf32>, vector<64x128xf32>, vector<16x128xf32> -> vector<16x128xf32>
    %cst_35 = arith.constant dense<0.000000e+00> : vector<16x128xf32>
    %35 = tpu.matmul %3, %28, %cst_35 {dimension_numbers = #tpu.dot_dimension_numbers<[1], [0], [0], [1], [0, 0, 1, 1], [], []>} : vector<16x16xf32>, vector<16x128xf32>, vector<16x128xf32> -> vector<16x128xf32>
    %36 = arith.addf %31, %35 : vector<16x128xf32>
    %cst_36 = arith.constant dense<0.000000e+00> : vector<16x128xf32>
    %37 = tpu.matmul %5, %34, %cst_36 {dimension_numbers = #tpu.dot_dimension_numbers<[1], [0], [0], [1], [0, 0, 1, 1], [], []>} : vector<16x16xf32>, vector<16x128xf32>, vector<16x128xf32> -> vector<16x128xf32>
    %38 = arith.addf %36, %37 : vector<16x128xf32>
    %c0_37 = arith.constant 0 : index
    %c0_38 = arith.constant 0 : index
    %39 = vector.load %arg6[%c0_37, %c0_38] : memref<64x128xf32, #tpu.memory_space<vmem>>, vector<64x128xf32>
    %cst_39 = arith.constant dense<0.000000e+00> : vector<16x128xf32>
    %40 = tpu.matmul %1, %39, %cst_39 {dimension_numbers = #tpu.dot_dimension_numbers<[1], [0], [0], [1], [0, 0, 1, 1], [], []>} : vector<16x64xf32>, vector<64x128xf32>, vector<16x128xf32> -> vector<16x128xf32>
    %41 = arith.addf %38, %40 : vector<16x128xf32>
    %c0_40 = arith.constant 0 : index
    %c0_41 = arith.constant 0 : index
    %42 = vector.load %arg7[%c0_40, %c0_41] : memref<1x128xf32, #tpu.memory_space<vmem>>, vector<1x128xf32>
    %43 = vector.broadcast %42 : vector<1x128xf32> to vector<16x128xf32>
    %44 = arith.addf %41, %43 : vector<16x128xf32>
    %c0_42 = arith.constant 0 : index
    %c0_43 = arith.constant 0 : index
    %45 = vector.load %arg9[%c0_42, %c0_43] : memref<8x16xf32, #tpu.memory_space<vmem>>, vector<8x16xf32>
    %46 = vector.extract_strided_slice %45 {offsets = [0, 0], sizes = [4, 16], strides = [1, 1]} : vector<8x16xf32> to vector<4x16xf32>
    %c0_44 = arith.constant 0 : index
    %c0_45 = arith.constant 0 : index
    %c0_46 = arith.constant 0 : index
    %47 = vector.load %arg8[%c0_44, %c0_45, %c0_46] : memref<2x128x128xf32, #tpu.memory_space<vmem>>, vector<1x128x128xf32>
    %48 = vector.shape_cast %47 : vector<1x128x128xf32> to vector<128x128xf32>
    %cst_47 = arith.constant dense<0.000000e+00> : vector<16x128xf32>
    %49 = tpu.matmul %44, %48, %cst_47 {dimension_numbers = #tpu.dot_dimension_numbers<[1], [0], [0], [1], [0, 0, 1, 1], [], []>} : vector<16x128xf32>, vector<128x128xf32>, vector<16x128xf32> -> vector<16x128xf32>
    %cst_48 = arith.constant dense<0.000000e+00> : vector<4x128xf32>
    %50 = tpu.matmul %46, %49, %cst_48 {dimension_numbers = #tpu.dot_dimension_numbers<[1], [0], [0], [1], [0, 0, 1, 1], [], []>} : vector<4x16xf32>, vector<16x128xf32>, vector<4x128xf32> -> vector<4x128xf32>
    %51 = vector.extract_strided_slice %45 {offsets = [4, 0], sizes = [4, 16], strides = [1, 1]} : vector<8x16xf32> to vector<4x16xf32>
    %c1_49 = arith.constant 1 : index
    %c0_50 = arith.constant 0 : index
    %c0_51 = arith.constant 0 : index
    %52 = vector.load %arg8[%c1_49, %c0_50, %c0_51] : memref<2x128x128xf32, #tpu.memory_space<vmem>>, vector<1x128x128xf32>
    %53 = vector.shape_cast %52 : vector<1x128x128xf32> to vector<128x128xf32>
    %cst_52 = arith.constant dense<0.000000e+00> : vector<16x128xf32>
    %54 = tpu.matmul %44, %53, %cst_52 {dimension_numbers = #tpu.dot_dimension_numbers<[1], [0], [0], [1], [0, 0, 1, 1], [], []>} : vector<16x128xf32>, vector<128x128xf32>, vector<16x128xf32> -> vector<16x128xf32>
    %cst_53 = arith.constant dense<0.000000e+00> : vector<4x128xf32>
    %55 = tpu.matmul %51, %54, %cst_53 {dimension_numbers = #tpu.dot_dimension_numbers<[1], [0], [0], [1], [0, 0, 1, 1], [], []>} : vector<4x16xf32>, vector<16x128xf32>, vector<4x128xf32> -> vector<4x128xf32>
    %56 = arith.addf %50, %55 : vector<4x128xf32>
    %c0_54 = arith.constant 0 : index
    %c0_55 = arith.constant 0 : index
    %c0_56 = arith.constant 0 : index
    %57 = vector.load %arg10[%c0_54, %c0_55, %c0_56] : memref<1x4x128xf32, #tpu.memory_space<vmem>>, vector<1x4x128xf32>
    %58 = vector.shape_cast %57 : vector<1x4x128xf32> to vector<4x128xf32>
    %59 = vector.shape_cast %56 : vector<4x128xf32> to vector<1x4x128xf32>
    tpu.vector_store %arg10[%c0_54, %c0_55, %c0_56], %59 {strides = array<i32>} : memref<1x4x128xf32, #tpu.memory_space<vmem>>, vector<1x4x128xf32>,
    return
  }
  func.func @transform_0(%arg0: i32) -> (i32, i32, i32) {
    %c0_i32 = arith.constant 0 : i32
    %c0_i32_0 = arith.constant 0 : i32
    %c0_i32_1 = arith.constant 0 : i32
    return %arg0, %c0_i32, %c0_i32_0 : i32, i32, i32
  }
  func.func @transform_1(%arg0: i32) -> (i32, i32, i32) {
    %c0_i32 = arith.constant 0 : i32
    %c0_i32_0 = arith.constant 0 : i32
    %c0_i32_1 = arith.constant 0 : i32
    %c0_i32_2 = arith.constant 0 : i32
    return %c0_i32, %c0_i32_0, %c0_i32_1 : i32, i32, i32
  }
  func.func @transform_2(%arg0: i32) -> (i32, i32) {
    %c0_i32 = arith.constant 0 : i32
    %c0_i32_0 = arith.constant 0 : i32
    %c0_i32_1 = arith.constant 0 : i32
    return %c0_i32, %c0_i32_0 : i32, i32
  }
  func.func @transform_3(%arg0: i32) -> (i32, i32, i32) {
    %c0_i32 = arith.constant 0 : i32
    %c0_i32_0 = arith.constant 0 : i32
    %c0_i32_1 = arith.constant 0 : i32
    %c0_i32_2 = arith.constant 0 : i32
    return %c0_i32, %c0_i32_0, %c0_i32_1 : i32, i32, i32
  }
  func.func @transform_4(%arg0: i32) -> (i32, i32, i32) {
    %c0_i32 = arith.constant 0 : i32
    %c0_i32_0 = arith.constant 0 : i32
    %c0_i32_1 = arith.constant 0 : i32
    %c0_i32_2 = arith.constant 0 : i32
    return %c0_i32, %c0_i32_0, %c0_i32_1 : i32, i32, i32
  }
  func.func @transform_5(%arg0: i32) -> (i32, i32) {
    %c0_i32 = arith.constant 0 : i32
    %c0_i32_0 = arith.constant 0 : i32
    %c0_i32_1 = arith.constant 0 : i32
    return %c0_i32, %c0_i32_0 : i32, i32
  }
  func.func @transform_6(%arg0: i32) -> (i32, i32) {
    %c0_i32 = arith.constant 0 : i32
    %c0_i32_0 = arith.constant 0 : i32
    %c0_i32_1 = arith.constant 0 : i32
    return %c0_i32, %c0_i32_0 : i32, i32
  }
  func.func @transform_7(%arg0: i32) -> (i32, i32, i32) {
    %c0_i32 = arith.constant 0 : i32
    %c0_i32_0 = arith.constant 0 : i32
    %c0_i32_1 = arith.constant 0 : i32
    %c0_i32_2 = arith.constant 0 : i32
    return %c0_i32, %c0_i32_0, %c0_i32_1 : i32, i32, i32
  }
  func.func @transform_8(%arg0: i32) -> (i32, i32) {
    %c0_i32 = arith.constant 0 : i32
    %c0_i32_0 = arith.constant 0 : i32
    %c0_i32_1 = arith.constant 0 : i32
    return %c0_i32, %c0_i32_0 : i32, i32
  }
  func.func @transform_9(%arg0: i32) -> (i32, i32, i32) {
    %c0_i32 = arith.constant 0 : i32
    %c0_i32_0 = arith.constant 0 : i32
    %c0_i32_1 = arith.constant 0 : i32
    return %arg0, %c0_i32, %c0_i32_0 : i32, i32, i32
  }
}

</mosaic_0001>

<bundles_post_ra>
// kernel: tpu_custom_call.1
= control target key start
LH: loop header
LB: loop body
LE: loop exit
PB: predicated region body
PF: predicated region fallthrough
CT: control target
= control target key end

     0   :  { %s3280_s0 = inlined_call_operand.hbm [shape: f32[2,16,64], index: 0, kind: input, shape index: {}]   ;;  %s3281_s1 = inlined_call_operand.hbm [shape: f32[3,64,64], index: 1, kind: input, shape index: {}]   ;;  %s3282_s2 = inlined_call_operand.vmem [shape: f32[1,64], index: 2, kind: input, shape index: {}]   ;;  %s3283_s3 = inlined_call_operand.hbm [shape: f32[3,64,128], index: 3, kind: input, shape index: {}]   ;;  %s3284_s4 = inlined_call_operand.hbm [shape: f32[2,16,16], index: 4, kind: input, shape index: {}]   ;;  %s3285_s5 = inlined_call_operand.hbm [shape: f32[64,128], index: 5, kind: input, shape index: {}]   ;;  %s3286_s6 = inlined_call_operand.vmem [shape: f32[1,128], index: 6, kind: input, shape index: {}]   ;;  %s3287_s7 = inlined_call_operand.hbm [shape: f32[2,128,128], index: 7, kind: input, shape index: {}]   ;;  %s3288_s8 = inlined_call_operand.vmem [shape: f32[8,16], index: 8, kind: input, shape index: {}]   ;;  %s3289_s9 = inlined_call_operand.hbm [shape: f32[2,4,128], index: 9, kind: output, shape index: {}]  }
   0x1   :  { %3295 = sst [smem:[#allocation19_spill]] %s3281_s1 }
   0x2   :  { %3296 = sst [smem:[#allocation20_spill]] %s3289_s9 }
   0x3   :  { %14 = vsyncpa [#allocation3], 0 }
   0x4   :  { %16 = vsyncpa [#allocation3 + $0x1], 0 }
   0x5   :  { %17 = vsyncpa [#allocation6], 0 }
   0x6   :  { %18 = vsyncpa [#allocation9], 0 }
   0x7   :  { %19 = vsyncpa [#allocation12], 0 }
   0x8   :  { %20 = vsyncpa [#allocation4], 0 }
   0x9   :  { %22 = vsyncpa [#allocation4 + $0x1], 0  ;;  %s2885_s30 = smov 0   ;;  %s2887_s10 = smov 0  }
   0xa   :  { %s2889_s11 = smov 0   ;;  %s2891_s12 = smov 0  }
   0xb LB: > { %s2823_s13 = smov [#allocation5]   ;;  %s2906_s15 = sadd.s32 4294967295, %s2821_s12   ;;  %s2821_s12 = sphi %s2891_s12, %s3321_s12   ;;  %s2817_s11 = sphi %s2889_s11, %s3320_s11   ;;  %s2813_s10 = sphi %s2887_s10, %s3319_s10   ;;  %s2809_s30 = sphi %s2885_s30, %s3318_s30  }
   0xc   : > { %s265_s14 = sshll.u32 %s2823_s13, 4  ;;  %p1840_p0 = scmp.ge.s32.totalorder %s2821_s12, 1  ;;  %s2911_s14 = int_to_ptr.vmem [resolvable:$true] %s265_s14 }
   0xd   : > { %p3291_p1 = scmp.eq.s32.totalorder %s2906_s15, 0  ;;  %p253_p2 = scmp.lt.s32.totalorder %s2821_s12, 3 }
   0xe   : > { %s2824_s17 = smov [#allocation8]   ;;  %s2825_s20 = smov [#allocation7]  }
   0xf   : > { %p2913_p3 = pnand %p1840_p0, %p253_p2  ;;  %s294_s18 = sshll.u32 %s2824_s17, 4  ;;  %s2926_s18 = int_to_ptr.vmem [resolvable:$true] %s294_s18 }
  0x10   : > { %s281_s21 = sshll.u32 %s2825_s20, 4  ;;  %s3299_s1 = sld [smem:[#allocation19_spill]]  ;;  %s2928_s21 = int_to_ptr.vmem [resolvable:$true] %s281_s21 }
  0x11   : > { %s3297_s16 = scalar_select %p2913_p3, 1, 0 }
  0x12   : > { %p2495_p5 = pneg %p2913_p3 }
  0x14   : > { %p2922_p6 = pnand %p2495_p5, %p3291_p1 }
  0x16   : > { %s2573_s24 = scalar_lea.hbm %s3299_s1, 3072  ;;  %p2938_p8 = pneg %p2922_p6 }
  0x17   : > { %p2574_p7 = scmp.ne.s32.totalorder %s3299_s1, %s2573_s24  ;;  %p2580_p11 = scmp.lt.u32.totalorder %s2573_s24, %s3299_s1 }
  0x19   : > { %p2576_p9 = pnand %p2938_p8, %p2574_p7 }
  0x1b   : > { %p2577_p10 = pneg %p2576_p9 }
  0x1d   : > { %p2582_p12 = pnand %p2580_p11, %p2577_p10 }
  0x1f   : > { %2585 = shalt.err (!%p2582_p12)
}
  0x20   : > { %s2586_s13 = scalar_lea.vmem %s2911_s14, 3072  ;;  %p2594_p5 = scmp.lt.s32.totalorder %s2911_s14, %s2911_s14 }
  0x21   : > { %p2587_p13 = scmp.ne.s32.totalorder %s2911_s14, %s2586_s13  ;;  %p2595_p4 = scmp.lt.s32.totalorder %s2586_s13, %s2586_s13 }
  0x23   : > { %p2589_p0 = pnand %p2587_p13, %p2938_p8  ;;  %p2596_p7 = por %p2595_p4, %p2594_p5 }
  0x25   : > { %p2590_p2 = pneg %p2589_p0 }
  0x27   : > { %p2597_p9 = pnand %p2596_p7, %p2590_p2 }
  0x29   : > { %2600 = shalt.err (!%p2597_p9)
}
  0x2a   : > { %s3293_s17 = smov 128   ;;  %s2827_s20 = smov 8  }
  0x2b   : > { %2498 = dma.hbm_to_vmem [thread:$0]  (!%p2922_p6), %s3299_s1, 3072, %s2911_s14, [#allocation6], %s3293_s17, %s3293_s17, %s2827_s20  }
  0x2c   : > { %s2601_s26 = scalar_lea.hbm %s3284_s4, 512 }
  0x2d   : > { %p2602_p4 = scmp.ne.s32.totalorder %s3284_s4, %s2601_s26  ;;  %p2608_p12 = scmp.lt.u32.totalorder %s2601_s26, %s3284_s4 }
  0x2f   : > { %p2604_p10 = pnand %p2602_p4, %p2938_p8 }
  0x31   : > { %p2605_p11 = pneg %p2604_p10 }
  0x33   : > { %p2610_p13 = pnand %p2608_p12, %p2605_p11 }
  0x35   : > { %2613 = shalt.err (!%p2610_p13)
}
  0x36   : > { %s2614_s14 = scalar_lea.vmem %s2926_s18, 512  ;;  %p2622_p7 = scmp.lt.s32.totalorder %s2926_s18, %s2926_s18 }
  0x37   : > { %p2615_p0 = scmp.ne.s32.totalorder %s2926_s18, %s2614_s14  ;;  %p2623_p9 = scmp.lt.s32.totalorder %s2614_s14, %s2614_s14 }
  0x39   : > { %p2617_p2 = pnand %p2615_p0, %p2938_p8  ;;  %p2624_p4 = por %p2623_p9, %p2622_p7 }
  0x3b   : > { %p2618_p5 = pneg %p2617_p2 }
  0x3d   : > { %p2625_p10 = pnand %p2624_p4, %p2618_p5 }
  0x3f   : > { %2628 = shalt.err (!%p2625_p10)
}
  0x40   : > { %2504 = dma.hbm_to_vmem [thread:$0]  (!%p2922_p6), %s3284_s4, 512, %s2926_s18, [#allocation9], %s3293_s17, %s3293_s17, %s2827_s20  }
  0x41   : > { %s2629_s25 = scalar_lea.hbm %s3283_s3, 3072 }
  0x42   : > { %p2630_p11 = scmp.ne.s32.totalorder %s3283_s3, %s2629_s25  ;;  %p2636_p0 = scmp.lt.u32.totalorder %s2629_s25, %s3283_s3 }
  0x44   : > { %p2632_p12 = pnand %p2630_p11, %p2938_p8 }
  0x46   : > { %p2633_p13 = pneg %p2632_p12 }
  0x48   : > { %p2638_p2 = pnand %p2636_p0, %p2633_p13 }
  0x4a   : > { %2641 = shalt.err (!%p2638_p2)
}
  0x4b   : > { %s2642_s18 = scalar_lea.vmem %s2928_s21, 3072  ;;  %p2650_p4 = scmp.lt.s32.totalorder %s2928_s21, %s2928_s21 }
  0x4c   : > { %p2643_p5 = scmp.ne.s32.totalorder %s2928_s21, %s2642_s18  ;;  %p2651_p10 = scmp.lt.s32.totalorder %s2642_s18, %s2642_s18 }
  0x4e   : > { %p2645_p7 = pnand %p2643_p5, %p2938_p8  ;;  %p2652_p11 = por %p2651_p10, %p2650_p4 }
  0x50   : > { %p2646_p9 = pneg %p2645_p7 }
  0x52   : > { %p2653_p12 = pnand %p2652_p11, %p2646_p9 }
  0x54   : > { %2656 = shalt.err (!%p2653_p12)
}
  0x55   : > { %2501 = dma.hbm_to_vmem [thread:$0]  (!%p2922_p6), %s3283_s3, 3072, %s2928_s21, [#allocation6], %s3293_s17, %s3293_s17, %s2827_s20  }
  0x56   : > { %s2828_s22 = smov [#allocation10]   ;;  %s2829_s24 = smov [#allocation11]  }
  0x57   : > { %s307_s23 = sshll.u32 %s2828_s22, 4  ;;  %s323_s25 = sshll.u32 %s2829_s24, 4  ;;  %s308_s23 = int_to_ptr.vmem [resolvable:$true] %s307_s23  ;;  %s324_s25 = int_to_ptr.vmem [resolvable:$true] %s323_s25 }
  0x58   : > { %s2657_s29 = scalar_lea.hbm %s3285_s5, 1024 }
  0x59   : > { %p2658_p13 = scmp.ne.s32.totalorder %s3285_s5, %s2657_s29  ;;  %p2664_p5 = scmp.lt.u32.totalorder %s2657_s29, %s3285_s5 }
  0x5b   : > { %p2660_p0 = pnand %p2658_p13, %p2938_p8 }
  0x5d   : > { %p2661_p2 = pneg %p2660_p0 }
  0x5f   : > { %p2666_p7 = pnand %p2664_p5, %p2661_p2 }
  0x61   : > { %2669 = shalt.err (!%p2666_p7)
}
  0x62   : > { %s2670_s21 = scalar_lea.vmem %s308_s23, 1024  ;;  %p2678_p11 = scmp.lt.s32.totalorder %s308_s23, %s308_s23 }
  0x63   : > { %p2671_p9 = scmp.ne.s32.totalorder %s308_s23, %s2670_s21  ;;  %p2679_p12 = scmp.lt.s32.totalorder %s2670_s21, %s2670_s21 }
  0x65   : > { %p2673_p4 = pnand %p2671_p9, %p2938_p8  ;;  %p2680_p1 = por %p2679_p12, %p2678_p11 }
  0x67   : > { %p2674_p10 = pneg %p2673_p4 }
  0x69   : > { %p2681_p3 = pnand %p2680_p1, %p2674_p10 }
  0x6b   : > { %2684 = shalt.err (!%p2681_p3)
}
  0x6c   : > { %2507 = dma.hbm_to_vmem [thread:$0]  (!%p2922_p6), %s3285_s5, 1024, %s308_s23, [#allocation9], %s3293_s17, %s3293_s17, %s2827_s20  }
  0x6d   : > { %s2685_s26 = scalar_lea.hbm %s3287_s7, 4096 }
  0x6e   : > { %p2686_p1 = scmp.ne.s32.totalorder %s3287_s7, %s2685_s26  ;;  %p2692_p0 = scmp.lt.u32.totalorder %s2685_s26, %s3287_s7 }
  0x70   : > { %p2688_p3 = pnand %p2686_p1, %p2938_p8 }
  0x72   : > { %p2689_p13 = pneg %p2688_p3 }
  0x74   : > { %p2694_p2 = pnand %p2692_p0, %p2689_p13 }
  0x76   : > { %2697 = shalt.err (!%p2694_p2)
}
  0x77   : > { %s2698_s14 = scalar_lea.vmem %s324_s25, 4096  ;;  %p2706_p4 = scmp.lt.s32.totalorder %s324_s25, %s324_s25 }
  0x78   : > { %p2699_p5 = scmp.ne.s32.totalorder %s324_s25, %s2698_s14  ;;  %p2707_p10 = scmp.lt.s32.totalorder %s2698_s14, %s2698_s14 }
  0x7a   : > { %p2701_p7 = pnand %p2699_p5, %p2938_p8  ;;  %p2708_p11 = por %p2707_p10, %p2706_p4 }
  0x7c   : > { %p2702_p9 = pneg %p2701_p7 }
  0x7e   : > { %p2709_p12 = pnand %p2708_p11, %p2702_p9 }
  0x80   : > { %2712 = shalt.err (!%p2709_p12)
}
  0x81   : > { %2510 = dma.hbm_to_vmem [thread:$0]  (!%p2922_p6), %s3287_s7, 4096, %s324_s25, [#allocation12], %s3293_s17, %s3293_s17, %s2827_s20  }
  0x82   : > { %s1839_s19 = sadd.s32 4294967294, %s2821_s12   ;;  %s3058_s27 = sadd.s32 1, %s2821_s12  }
  0x83   : > { %s35_s1 = sadd.s32 1, %s2817_s11  ;;  %s32_s9 = ssub.s32 %s2821_s12, %s3058_s27 }
  0x84   : > { %p42_p8 = scmp.ne.s32.totalorder %s2817_s11, %s2813_s10  ;;  %p33_p1 = scmp.eq.s32.totalorder %s32_s9, 0 }
  0x85   : > { %p43_p3 = scmp.eq.s32.totalorder %s2821_s12, 0  ;;  %p48_p13 = scmp.ne.s32.totalorder %s2813_s10, %s2809_s30 }
  0x86   : > { %p240_p0 = scmp.eq.s32.totalorder %s2906_s15, 1  ;;  %p3301_p5 = scmp.eq.s32.totalorder %s2906_s15, 0 }
  0x87   : > { %s3070_s22 = scalar_select %p33_p1, %s2817_s11, %s35_s1  }
  0x88   : > { %p44_p2 = por %p43_p3, %p42_p8  ;;  %p3074_p7 = por %p3301_p5, %p48_p13 }
  0x89   : > { %p3078_p6 = por %p240_p0, %p42_p8  ;;  %p246_p9 = scmp.eq.s32.totalorder %s1839_s19, 1 }
  0x8a   : > { %p2524_p4 = scmp.lt.s32.totalorder %s2821_s12, 2  ;;  %s340_s26 = sand.u32 1, %s2817_s11  }
  0x8b   : > { %s3303_s25 = scalar_select %p3078_p6, 1, 0 }
  0x8c   : > { %p3084_p10 = por %p246_p9, %p48_p13  ;;  %s1847_s29 = sshll.u32 %s340_s26, 4 }
  0x8d   : > { %s1888_s13 = sshll.u32 %s2821_s12, 8  ;;  %s344_s21 = scalar_lea.vmem [#allocation2], %s1847_s29 }
  0x8e   : > { %s3304_s28 = scalar_select %p3084_p10, 1, 0 }
  0x8f   : > { %s3092_s23 = scalar_lea.hbm %s3280_s0, %s1888_s13  ;;  %s351_s1 = sshll.u32 %s344_s21, 4  ;;  %s3098_s1 = int_to_ptr.vmem [resolvable:$true] %s351_s1 }
  0x90   : > { %p3094_p11 = pnand %p2524_p4, %p44_p2  ;;  %s3100_s9 = scalar_lea.sflag [#allocation3], %s340_s26 }
  0x91   : > { %s2713_s17 = scalar_lea.hbm %s3092_s23, 256  ;;  %s2718_s18 = scalar_lea.hbm %s3280_s0, 512 }
  0x92   : > { %p2714_p12 = scmp.ne.s32.totalorder %s3092_s23, %s2713_s17  ;;  %p2715_p8 = pneg %p3094_p11 }
  0x93   : > { %p2719_p13 = scmp.lt.u32.totalorder %s3092_s23, %s3280_s0  ;;  %p2720_p0 = scmp.lt.u32.totalorder %s2718_s18, %s2713_s17 }
  0x94   : > { %p2716_p1 = pnand %p2715_p8, %p2714_p12  ;;  %p2722_p5 = scmp.lt.u32.totalorder %s2713_s17, %s3092_s23 }
  0x95   : > { %p2721_p2 = por %p2720_p0, %p2719_p13 }
  0x96   : > { %p2717_p3 = pneg %p2716_p1 }
  0x97   : > { %p2723_p9 = por %p2722_p5, %p2721_p2 }
  0x99   : > { %p2724_p4 = pnand %p2723_p9, %p2717_p3 }
  0x9b   : > { %2727 = shalt.err (!%p2724_p4)
}
  0x9c   : > { %s2728_s26 = scalar_lea.vmem %s3098_s1, 256  ;;  %s2830_s29 = smov [#allocation2]  }
  0x9d   : > { %p2729_p12 = scmp.ne.s32.totalorder %s3098_s1, %s2728_s26  ;;  %s2733_s13 = sshll.u32 %s2830_s29, 4  ;;  %s2734_s13 = int_to_ptr.vmem [resolvable:$false] %s2733_s13 }
  0x9e   : > { %s2735_s14 = scalar_lea.vmem %s2734_s13, 512  ;;  %p2736_p6 = scmp.lt.s32.totalorder %s3098_s1, %s2734_s13 }
  0x9f   : > { %p2731_p1 = pnand %p2729_p12, %p2715_p8  ;;  %p2737_p13 = scmp.lt.s32.totalorder %s2735_s14, %s2728_s26 }
  0xa1   : > { %p2732_p10 = pneg %p2731_p1  ;;  %p2738_p0 = por %p2737_p13, %p2736_p6 }
  0xa3   : > { %p2739_p2 = pnand %p2738_p0, %p2732_p10 }
  0xa5   : > { %2742 = shalt.err (!%p2739_p2)
}
  0xa6   : > { %s3306_s17 = smov 128   ;;  %p3307_p8 = scmp.ne.s32.totalorder %s3297_s16, 0 }
  0xa7   : > { %2514 = dma.hbm_to_vmem [thread:$0]  (!%p3094_p11), %s3092_s23, 256, %s3098_s1, %s3100_s9, %s3306_s17, %s3306_s17, %s2827_s20  }
  0xa8   : > { %363 = sbr.rel (%p3307_p8) target bundleno = 1587 (0x633), region = 56  ;;  %s3134_s18 = sand.u32 (!%p3307_p8), 1, %s2813_s10  }
  0xa9   : > { %s1851_s21 = sshll.u32 (!%p3307_p8), %s3134_s18, 4  ;;  %s366_s26 = scalar_lea.sflag (!%p3307_p8), [#allocation3], %s3134_s18 }
  0xaa   : > { %s3138_s29 = scalar_lea.vmem (!%p3307_p8), [#allocation2], %s1851_s21 }
  0xaf   : > { %2788 = dma.done.wait (%p3074_p7), %s366_s26, 256  }
  0xb0   : > { %2790 = vsyncadd (%p3074_p7), %s366_s26, 4294967040  ;;  %p3308_p6 = scmp.eq.s32.totalorder %s2906_s15, 0 }
  0xb2   : > { %2792 = dma.done.wait (%p3308_p6), [#allocation6], 6144   ;;  %p3309_p10 = pmov %p3308_p6 }
  0xb3   : > { %p3310_p11 = pmov %p3308_p6 }
  0xb4   : > { %2794 = vsyncadd (%p3309_p10), [#allocation6], 4294961152 }
  0xb5   : > { %2796 = dma.done.wait (%p3310_p11), [#allocation9], 1536   ;;  %p3311_p3 = pmov %p3308_p6 }
  0xb7   : > { %2798 = vsyncadd (%p3311_p3), [#allocation9], 4294965760  ;;  %p3312_p5 = pmov %p3311_p3 }
  0xb8   : > { %p3313_p9 = pmov %p3311_p3 }
  0xb9   : > { %2800 = dma.done.wait (%p3312_p5), [#allocation12], 4096  }
  0xba   : > { %2802 = vsyncadd (%p3313_p9), [#allocation12], 4294963200  ;;  %v433_v0 = vld [vmem:[#allocation5] sm:$0xff]  ;;  %v434_v1 = vld [vmem:[#allocation5 + $0x8] sm:$0xff]  ;;  %vm441_vm0 = vcmask 523264   ;;  %vm616_vm1 = vcmask 130048  }
  0xbb   : > { %v435_v2 = vld [vmem:[#allocation5 + $0x10] sm:$0xff]  ;;  %v2262_v3 = vpack.c.bf16 %v434_v1, %v433_v0  ;;  %v436_v4 = vld [vmem:[#allocation5 + $0x18] sm:$0xff]  ;;  %v437_v6 = vld [vmem:[#allocation5 + $0x20] sm:$0xff]  ;;  %vm2832_vm2 = vmmov 0   ;;  %s1857_s9 = sshll.u32 %s3134_s18, 2  ;;  %s1885_s13 = sshll.u32 %s2906_s15, 6 }
  0xbc   : > { %v2266_v5 = vpack.c.bf16 %v436_v4, %v435_v2  ;;  %v438_v7 = vld [vmem:[#allocation5 + $0x28] sm:$0xff]  ;;  %v3157_v8 = vld [vmem:[%s3138_s29] sm:$0xff]  ;;  %v440_v12 = vld [vmem:[#allocation5 + $0x38] sm:$0xff]  ;;  %s423_s14 = scalar_lea.vmem [#allocation13], %s1857_s9  ;;  %s1708_s20 = scalar_lea.sflag [#allocation4], %s3134_s18 }
  0xbd   : > { %2263 = vmatprep.subr.bf16.mxu1 %v2262_v3  ;;  %v3160_v9 = vmax.f32 %v3157_v8, 0.0  ;;  %v2270_v10 = vpack.c.bf16 %v438_v7, %v437_v6  ;;  %v439_v11 = vld [vmem:[#allocation5 + $0x30] sm:$0xff]  ;;  %v533_v14 = vld [vmem:[#allocation5 + $0x80] sm:$0xff]  ;;  %v534_v15 = vld [vmem:[#allocation5 + $0x88] sm:$0xff]  ;;  %s1721_s17 = sshll.u32 %s423_s14, 4  ;;  %p3315_p4 = scmp.ne.s32.totalorder %s3303_s25, 0  ;;  %s3238_s17 = int_to_ptr.vmem [resolvable:$true] %s1721_s17 }
  0xbe   : > { %2265 = vmatpush3.bf16.msra.mxu1 %v2262_v3  ;;  %v2274_v13 = vpack.c.bf16 %v440_v12, %v439_v11  ;;  %v3165_v16 = vld [vmem:[%s3138_s29 + $0x8] sm:$0xff]  ;;  %v2278_v17 = vpack.c.bf16 %v534_v15, %v533_v14  ;;  %v535_v18 = vld [vmem:[#allocation5 + $0x90] sm:$0xff]  ;;  %v537_v22 = vld [vmem:[#allocation5 + $0xa0] sm:$0xff]  ;;  %s3314_s29 = sld [smem:[#allocation20_spill]]  ;;  %s2743_s15 = scalar_lea.vmem %s3238_s17, 64 }
  0xbf   : > { %2267 = vmatprep.subr.bf16.mxu1 %v2266_v5  ;;  %2033 = vmatprep.mubr.msk.f32.mxu1 %vm441_vm0, %v3160_v9  ;;  %v536_v19 = vld [vmem:[#allocation5 + $0x98] sm:$0xff]  ;;  %v3168_v20 = vmax.f32 %v3165_v16, 0.0  ;;  %v538_v23 = vld [vmem:[#allocation5 + $0xa8] sm:$0xff]  ;;  %v539_v25 = vld [vmem:[#allocation5 + $0xb0] sm:$0xff]  ;;  %p2744_p7 = scmp.ne.s32.totalorder %s3238_s17, %s2743_s15  ;;  %s2834_s24 = smov [#allocation13]  }
  0xc0   : > { %v2282_v21 = vpack.c.bf16 %v536_v19, %v535_v18  ;;  %v2286_v24 = vpack.c.bf16 %v538_v23, %v537_v22  ;;  %v540_v26 = vld [vmem:[#allocation5 + $0xb8] sm:$0xff]  ;;  %v426_v28 = vld [vmem:[#allocation8] sm:$0xff]  ;;  %v868_v30 = vld [vmem:[#allocation7 + $0x8] sm:$0xff]  ;;  %s2747_s23 = sshll.u32 %s2834_s24, 4  ;;  %s2748_s23 = int_to_ptr.vmem [resolvable:$false] %s2747_s23 }
  0xc1   : > { %v2290_v27 = vpack.c.bf16 %v540_v26, %v539_v25  ;;  %2059 = vmatprep.mubr.msk.f32.mxu0 %vm616_vm1, %v426_v28  ;;  %v867_v29 = vld [vmem:[#allocation7] sm:$0xff]  ;;  %v869_v31 = vld [vmem:[#allocation7 + $0x10] sm:$0xff]  ;;  %v870_v33 = vld [vmem:[#allocation7 + $0x18] sm:$0xff]  ;;  %p2745_p12 = pnand %p2744_p7, %p3315_p4  ;;  %s2749_s1 = scalar_lea.vmem %s2748_s23, 128 }
  0xc2   : > { %2269 = vmatpush3.bf16.msra.mxu1 %v2266_v5  ;;  %v2318_v32 = vpack.c.bf16 %v868_v30, %v867_v29  ;;  %v2322_v34 = vpack.c.bf16 %v870_v33, %v869_v31  ;;  %v871_v35 = vld [vmem:[#allocation7 + $0x20] sm:$0xff]  ;;  %v872_v36 = vld [vmem:[#allocation7 + $0x28] sm:$0xff]  ;;  %v526_v44 = vld [vmem:[#allocation5 + $0x50] sm:$0xff]  ;;  %p2750_p13 = scmp.lt.s32.totalorder %s3238_s17, %s2748_s23  ;;  %p2751_p0 = scmp.lt.s32.totalorder %s2749_s1, %s2743_s15 }
  0xc3   : > { %2271 = vmatprep.subr.bf16.mxu1 %v2270_v10  ;;  %v2326_v37 = vpack.c.bf16 %v872_v36, %v871_v35  ;;  %v524_v38 = vld [vmem:[#allocation5 + $0x40] sm:$0xff]  ;;  %v525_v39 = vld [vmem:[#allocation5 + $0x48] sm:$0xff]  ;;  %v527_v45 = vld [vmem:[#allocation5 + $0x58] sm:$0xff]  ;;  %p2746_p1 = pneg %p2745_p12 }
  0xc4   : > { %v2298_v43 = vpack.c.bf16 %v525_v39, %v524_v38  ;;  %v3177_v46 = vld [vmem:[#allocation8 + $0x8] sm:$0xff]  ;;  %v2302_v47 = vpack.c.bf16 %v527_v45, %v526_v44  ;;  %v528_v48 = vld [vmem:[#allocation5 + $0x60] sm:$0xff]  ;;  %v530_v51 = vld [vmem:[#allocation5 + $0x70] sm:$0xff]  ;;  %s3236_s16 = scalar_lea.hbm %s3314_s29, %s1885_s13  ;;  %p2752_p2 = por %p2751_p0, %p2750_p13 }
  0xc5   : > { %v529_v49 = vld [vmem:[#allocation5 + $0x68] sm:$0xff]  ;;  %v531_v52 = vld [vmem:[#allocation5 + $0x78] sm:$0xff]  ;;  %v3183_v57 = vld [vmem:[#allocation8 + $0x10] sm:$0xff] }
  0xc6   : > { %2273 = vmatpush3.bf16.msra.mxu1 %v2270_v10  ;;  %v2306_v50 = vpack.c.bf16 %v529_v49, %v528_v48  ;;  %v2310_v53 = vpack.c.bf16 %v531_v52, %v530_v51  ;;  %v3189_v58 = vld [vmem:[#allocation8 + $0x18] sm:$0xff]  ;;  %v873_v59 = vld [vmem:[#allocation7 + $0x30] sm:$0xff]  ;;  %v966_v62 = vld [vmem:[#allocation7 + $0x80] sm:$0xff]  ;;  %p2753_p8 = pnand %p2752_p2, %p2746_p1 }
  0xc7   : > { %2275 = vmatprep.subr.bf16.mxu1 %v2274_v13  ;;  %v874_v60 = vld [vmem:[#allocation7 + $0x38] sm:$0xff]  ;;  %v967_v63 = vld [vmem:[#allocation7 + $0x88] sm:$0xff]  ;;  %v1868_v1 = vld [vmem:[%s3282_s2] ss:$0 sm:$0xff] }
  0xc8   : > { %v2330_v61 = vpack.c.bf16 %v874_v60, %v873_v59  ;;  %v2334_v0 = vpack.c.bf16 %v967_v63, %v966_v62  ;;  %v968_v6 = vld [vmem:[#allocation7 + $0x90] sm:$0xff]  ;;  %v969_v7 = vld [vmem:[#allocation7 + $0x98] sm:$0xff]  ;;  %v970_v12 = vld [vmem:[#allocation7 + $0xa0] sm:$0xff] }
  0xc9   : > { %v2338_v11 = vpack.c.bf16 %v969_v7, %v968_v6  ;;  %v972_v15 = vld [vmem:[#allocation7 + $0xb0] sm:$0xff]  ;;  %v1377_v19 = vld [vmem:[#allocation11] sm:$0xff]  ;;  %v1380_v23 = vld [vmem:[#allocation11 + $0x18] sm:$0xff] }
  0xca   : > { %2277 = vmatpush3.bf16.msra.mxu1 %v2274_v13  ;;  %v971_v13 = vld [vmem:[#allocation7 + $0xa8] sm:$0xff]  ;;  %v1379_v22 = vld [vmem:[#allocation11 + $0x10] sm:$0xff]  ;;  %v1381_v25 = vld [vmem:[#allocation11 + $0x20] sm:$0xff] }
  0xcb   : > { %2279 = vmatprep.subr.bf16.mxu1 %v2278_v17  ;;  %v2342_v14 = vpack.c.bf16 %v971_v13, %v970_v12  ;;  %v1382_v26 = vld [vmem:[#allocation11 + $0x28] sm:$0xff]  ;;  %v1384_v29 = vld [vmem:[#allocation11 + $0x38] sm:$0xff]  ;;  %v1385_v31 = vld [vmem:[#allocation11 + $0x40] sm:$0xff] }
  0xcc   : > { %v1388_v35 = vld [vmem:[#allocation11 + $0x58] sm:$0xff]  ;;  %v1390_v38 = vld [vmem:[#allocation11 + $0x68] sm:$0xff]  ;;  %v1278_v63 = vld [vmem:[#allocation10 + $0x10] sm:$0xff] }
  0xcd   : > { %2034 = vmatmul.mubr.msk.f32.vlgmr.msra.gmra.mrb[0].mxu1 %vm441_vm0, %v3168_v20  ;;  %v960_v48 = vld [vmem:[#allocation7 + $0x58] sm:$0xff]  ;;  %v962_v51 = vld [vmem:[#allocation7 + $0x68] sm:$0xff]  ;;  %v1469_v7 = vld [vmem:[#allocation11 + $0x80] sm:$0xff] }
  0xce   : > { %2281 = vmatpush3.bf16.msra.mxu1 %v2278_v17  ;;  %2052 = vmatprep.mubr.msk.f32.mxu1 %vm441_vm0, %v3160_v9  ;;  %v973_v17 = vld [vmem:[#allocation7 + $0xb8] sm:$0xff]  ;;  %v1277_v62 = vld [vmem:[#allocation10 + $0x8] sm:$0xff]  ;;  %v1473_v13 = vld [vmem:[#allocation11 + $0xa0] sm:$0xff] }
  0xcf   : > { %2283 = vmatprep.subr.bf16.mxu1 %v2282_v21  ;;  %v2346_v18 = vpack.c.bf16 %v973_v17, %v972_v15  ;;  %v1283_v6 = vld [vmem:[#allocation10 + $0x38] sm:$0xff]  ;;  %v1475_v15 = vld [vmem:[#allocation11 + $0xb0] sm:$0xff] }
  0xd0   : > { %v1472_v12 = vld [vmem:[#allocation11 + $0x98] sm:$0xff] }
  0xd1   : > { %v1476_v17 = vld [vmem:[#allocation11 + $0xb8] sm:$0xff] }
  0xd2   : > { %2285 = vmatpush3.bf16.msra.mxu1 %v2282_v21 }
  0xd3   : > { %2287 = vmatprep.subr.bf16.mxu1 %v2286_v24 }
  0xd6   : > { %2289 = vmatpush3.bf16.msra.mxu1 %v2286_v24  ;;  %v2394_v24 = vpack.c.bf16 %v1380_v23, %v1379_v22  ;;  %v1479_v22 = vld [vmem:[#allocation11 + $0xd0] sm:$0xff]  ;;  %v1480_v23 = vld [vmem:[#allocation11 + $0xd8] sm:$0xff] }
  0xd7   : > { %2291 = vmatprep.subr.bf16.mxu1 %v2290_v27 }
  0xda   : > { %2293 = vmatpush3.bf16.msra.mxu1 %v2290_v27  ;;  %v2398_v27 = vpack.c.bf16 %v1382_v26, %v1381_v25  ;;  %v1481_v25 = vld [vmem:[#allocation11 + $0xe0] sm:$0xff] }
  0xdb   : > { %2319 = vmatprep.subr.bf16.mxu1 %v2318_v32 }
  0xdd   : > { %2053 = vmatmul.mubr.msk.f32.vlgmr.msra.gmra.mrb[2].mxu1 %vm441_vm0, %v3168_v20 }
  0xde   : > { %2321 = vmatpush3.bf16.msra.mxu1 %v2318_v32  ;;  %v1386_v32 = vld [vmem:[#allocation11 + $0x48] sm:$0xff] }
  0xdf   : > { %2323 = vmatprep.subr.bf16.mxu1 %v2322_v34  ;;  %v2406_v33 = vpack.c.bf16 %v1386_v32, %v1385_v31  ;;  %v1484_v31 = vld [vmem:[#allocation11 + $0xf8] sm:$0xff] }
  0xe2   : > { %2325 = vmatpush3.bf16.msra.mxu1 %v2322_v34  ;;  %v1387_v34 = vld [vmem:[#allocation11 + $0x50] sm:$0xff] }
  0xe3   : > { %2327 = vmatprep.subr.bf16.mxu1 %v2326_v37  ;;  %v2410_v36 = vpack.c.bf16 %v1388_v35, %v1387_v34 }
  0xe6   : > { %2329 = vmatpush3.bf16.msra.mxu1 %v2326_v37  ;;  %v1389_v37 = vld [vmem:[#allocation11 + $0x60] sm:$0xff] }
  0xe7   : > { %2331 = vmatprep.subr.bf16.mxu1 %v2330_v61  ;;  %v2414_v39 = vpack.c.bf16 %v1390_v38, %v1389_v37  ;;  %v2831_v38 = vmov 0.0|0.0  }
  0xea   : > { %2333 = vmatpush3.bf16.msra.mxu1 %v2330_v61  ;;  %v1276_v61 = vld [vmem:[#allocation10] sm:$0xff] }
  0xeb   : > { %2335 = vmatprep.subr.bf16.mxu1 %v2334_v0 }
 0x1a0   : > { %v2035_v40 = vpop.f32.mrb[0].mxu1 }
 0x1a1   : > { %v514_v41 = vpop.f32.mrb[1].mxu1 }
 0x1a2   : > { %v2294_v42 = vpack.c.bf16 %v2035_v40, %v514_v41  ;;  %v957_v40 = vld [vmem:[#allocation7 + $0x40] sm:$0xff]  ;;  %v958_v41 = vld [vmem:[#allocation7 + $0x48] sm:$0xff] }
 0x1a3   : > { %v2354_v45 = vpack.c.bf16 %v958_v41, %v957_v40 }
 0x1a4   : > { %2295 = vmatprep.subr.bf16.mxu0 %v2294_v42 }
 0x1a5   : > { %2297 = vmatpush3.bf16.msra.mxu0 %v2294_v42 }
 0x1a6   : > { %2299 = vmatprep.subr.bf16.mxu0 %v2298_v43 }
 0x1a8   : > { %2060 = vmatmul.mubr.msk.f32.vlgmr.msra.gmra.mrb[0].mxu0 %vm616_vm1, %v3177_v46 }
 0x1a9   : > { %2301 = vmatpush3.bf16.msra.mxu0 %v2298_v43  ;;  %2078 = vmatprep.mubr.msk.f32.mxu0 %vm441_vm0, %v3160_v9 }
 0x1aa   : > { %2303 = vmatprep.subr.bf16.mxu0 %v2302_v47 }
 0x1ad   : > { %2305 = vmatpush3.bf16.msra.mxu0 %v2302_v47  ;;  %v959_v47 = vld [vmem:[#allocation7 + $0x50] sm:$0xff] }
 0x1ae   : > { %2307 = vmatprep.subr.bf16.mxu0 %v2306_v50  ;;  %v2358_v49 = vpack.c.bf16 %v960_v48, %v959_v47 }
 0x1b0   : > { %v2054_v54 = vpop.f32.mrb[2].mxu1 }
 0x1b1   : > { %2309 = vmatpush3.bf16.msra.mxu0 %v2306_v50  ;;  %v607_v55 = vpop.f32.mrb[3].mxu1  ;;  %v961_v50 = vld [vmem:[#allocation7 + $0x60] sm:$0xff] }
 0x1b2   : > { %v2314_v56 = vpack.c.bf16 %v2054_v54, %v607_v55  ;;  %2311 = vmatprep.subr.bf16.mxu0 %v2310_v53  ;;  %v2362_v52 = vpack.c.bf16 %v962_v51, %v961_v50  ;;  %v964_v54 = vld [vmem:[#allocation7 + $0x78] sm:$0xff] }
 0x1b5   : > { %2313 = vmatpush3.bf16.msra.mxu0 %v2310_v53  ;;  %v963_v53 = vld [vmem:[#allocation7 + $0x70] sm:$0xff] }
 0x1b6   : > { %2315 = vmatprep.subr.bf16.mxu0 %v2314_v56  ;;  %v2366_v55 = vpack.c.bf16 %v964_v54, %v963_v53 }
 0x1b8   : > { %2079 = vmatmul.mubr.msk.f32.vlgmr.msra.gmra.mrb[0].mxu0 %vm441_vm0, %v3168_v20  ;;  %v1378_v20 = vld [vmem:[#allocation11 + $0x8] sm:$0xff] }
 0x1b9   : > { %2317 = vmatpush3.bf16.msra.mxu0 %v2314_v56  ;;  %2085 = vmatprep.mubr.msk.f32.mxu0 %vm616_vm1, %v3183_v57  ;;  %v2390_v21 = vpack.c.bf16 %v1378_v20, %v1377_v19  ;;  %v1477_v19 = vld [vmem:[#allocation11 + $0xc0] sm:$0xff]  ;;  %v1478_v20 = vld [vmem:[#allocation11 + $0xc8] sm:$0xff] }
 0x1c0   : > { %2086 = vmatmul.mubr.msk.f32.vlgmr.msra.gmra.mrb[0].mxu0 %vm616_vm1, %v3189_v58 }
 0x1c1   : > { %2130 = vmatprep.mubr.msk.f32.mxu0 %vm616_vm1, %v426_v28  ;;  %v1383_v28 = vld [vmem:[#allocation11 + $0x30] sm:$0xff] }
 0x1c2   : > { %v2402_v30 = vpack.c.bf16 %v1384_v29, %v1383_v28  ;;  %v1392_v28 = vld [vmem:[#allocation11 + $0x78] sm:$0xff]  ;;  %v1483_v29 = vld [vmem:[#allocation11 + $0xf0] sm:$0xff] }
 0x1c3   : > { %v2450_v32 = vpack.c.bf16 %v1484_v31, %v1483_v29 }
 0x293   : > { %v2087_v2 = vpop.f32.mrb[0].mxu0 }
 0x294   : > { %v864_v3 = vadd.f32 %v2087_v2, %v1868_v1  ;;  %v845_v4 = vpop.f32.mrb[1].mxu0  ;;  %v1280_v2 = vld [vmem:[#allocation10 + $0x20] sm:$0xff] }
 0x295   : > { %v863_v5 = vadd.f32 %v1868_v1, %v845_v4 }
 0x296   : > { %v3199_v10 = vmax.f32 %v864_v3, 0.0  ;;  %v1281_v3 = vld [vmem:[#allocation10 + $0x28] sm:$0xff] }
 0x297   : > { %v3197_v9 = vmax.f32 %v863_v5, 0.0  ;;  %v2382_v4 = vpack.c.bf16 %v1281_v3, %v1280_v2  ;;  %v1282_v5 = vld [vmem:[#allocation10 + $0x30] sm:$0xff] }
 0x299   : > { %2104 = vmatprep.mubr.msk.f32.mxu1 %vm441_vm0, %v3197_v9 }
 0x29a   : > { %2105 = vmatmul.mubr.msk.f32.vlgmr.msra.gmra.mrb[4].mxu1 %vm441_vm0, %v3199_v10 }
 0x29b   : > { %2337 = vmatpush3.bf16.msra.mxu1 %v2334_v0  ;;  %2123 = vmatprep.mubr.msk.f32.mxu1 %vm441_vm0, %v3197_v9  ;;  %v1279_v0 = vld [vmem:[#allocation10 + $0x18] sm:$0xff] }
 0x29c   : > { %2339 = vmatprep.subr.bf16.mxu1 %v2338_v11  ;;  %v2378_v1 = vpack.c.bf16 %v1279_v0, %v1278_v63 }
 0x29f   : > { %2341 = vmatpush3.bf16.msra.mxu1 %v2338_v11  ;;  %v1471_v11 = vld [vmem:[#allocation11 + $0x90] sm:$0xff] }
 0x2a0   : > { %2343 = vmatprep.subr.bf16.mxu1 %v2342_v14 }
 0x2a3   : > { %2345 = vmatpush3.bf16.msra.mxu1 %v2342_v14  ;;  %v1474_v14 = vld [vmem:[#allocation11 + $0xa8] sm:$0xff] }
 0x2a4   : > { %2347 = vmatprep.subr.bf16.mxu1 %v2346_v18 }
 0x2a7   : > { %2349 = vmatpush3.bf16.msra.mxu1 %v2346_v18  ;;  %v2434_v18 = vpack.c.bf16 %v1476_v17, %v1475_v15 }
 0x2a8   : > { %2391 = vmatprep.subr.bf16.mxu1 %v2390_v21 }
 0x2aa   : > { %2124 = vmatmul.mubr.msk.f32.vlgmr.msra.gmra.mrb[6].mxu1 %vm441_vm0, %v3199_v10 }
 0x2ab   : > { %2393 = vmatpush3.bf16.msra.mxu1 %v2390_v21  ;;  %v2438_v21 = vpack.c.bf16 %v1478_v20, %v1477_v19 }
 0x2ac   : > { %2395 = vmatprep.subr.bf16.mxu1 %v2394_v24 }
 0x2af   : > { %2397 = vmatpush3.bf16.msra.mxu1 %v2394_v24  ;;  %v2442_v24 = vpack.c.bf16 %v1480_v23, %v1479_v22 }
 0x2b0   : > { %2399 = vmatprep.subr.bf16.mxu1 %v2398_v27 }
 0x2b3   : > { %2401 = vmatpush3.bf16.msra.mxu1 %v2398_v27  ;;  %v1391_v27 = vld [vmem:[#allocation11 + $0x70] sm:$0xff] }
 0x2b4   : > { %2403 = vmatprep.subr.bf16.mxu1 %v2402_v30 }
 0x2b7   : > { %2405 = vmatpush3.bf16.msra.mxu1 %v2402_v30  ;;  %v2418_v30 = vpack.c.bf16 %v1392_v28, %v1391_v27 }
 0x2b8   : > { %2407 = vmatprep.subr.bf16.mxu1 %v2406_v33 }
 0x2bb   : > { %2409 = vmatpush3.bf16.msra.mxu1 %v2406_v33  ;;  %v1881_v33 = vld [vmem:[%s3286_s6] ss:$0 sm:$0xff] }
 0x2bc   : > { %2411 = vmatprep.subr.bf16.mxu1 %v2410_v36 }
 0x2bf   : > { %2413 = vmatpush3.bf16.msra.mxu1 %v2410_v36 }
 0x2c0   : > { %2415 = vmatprep.subr.bf16.mxu1 %v2414_v39 }
 0x2c3   : > { %2417 = vmatpush3.bf16.msra.mxu1 %v2414_v39  ;;  %v2833_v39 = vmov 0.0  }
 0x2c4   : > { %2419 = vmatprep.subr.bf16.mxu1 %v2418_v30 }
 0x2c7   : > { %2421 = vmatpush3.bf16.msra.mxu1 %v2418_v30 }
 0x2c8   : > { %2457 = vmatprep.subr.bf16.mxu1 %v2831_v38 }
 0x36d   : > { %v2106_v42 = vpop.f32.mrb[4].mxu1 }
 0x36e   : > { %v947_v43 = vpop.f32.mrb[5].mxu1 }
 0x36f   : > { %v2350_v44 = vpack.c.bf16 %v2106_v42, %v947_v43  ;;  %v1376_v42 = vld [vmem:[%s3288_s8] sm:$0xff] }
 0x370   : > { %v1561_v48 = vrot.slane %v1376_v42, 4 }
 0x371   : > { %2351 = vmatprep.subr.bf16.mxu0 %v2350_v44 }
 0x372   : > { %2353 = vmatpush3.bf16.msra.mxu0 %v2350_v44 }
 0x373   : > { %2355 = vmatprep.subr.bf16.mxu0 %v2354_v45 }
 0x375   : > { %2131 = vmatmul.mubr.msk.f32.vlgmr.msra.gmra.mrb[2].mxu0 %vm616_vm1, %v3177_v46  ;;  %v2374_v46 = vpack.c.bf16 %v1277_v62, %v1276_v61 }
 0x376   : > { %2357 = vmatpush3.bf16.msra.mxu0 %v2354_v45  ;;  %2149 = vmatprep.mubr.msk.f32.mxu0 %vm441_vm0, %v3197_v9  ;;  %v1470_v9 = vld [vmem:[#allocation11 + $0x88] sm:$0xff] }
 0x377   : > { %2359 = vmatprep.subr.bf16.mxu0 %v2358_v49 }
 0x37a   : > { %2361 = vmatpush3.bf16.msra.mxu0 %v2358_v49 }
 0x37b   : > { %2363 = vmatprep.subr.bf16.mxu0 %v2362_v52 }
 0x37d   : > { %v2125_v56 = vpop.f32.mrb[6].mxu1 }
 0x37e   : > { %v1040_v59 = vpop.f32.mrb[7].mxu1  ;;  %2365 = vmatpush3.bf16.msra.mxu0 %v2362_v52 }
 0x37f   : > { %v2370_v60 = vpack.c.bf16 %v2125_v56, %v1040_v59  ;;  %2367 = vmatprep.subr.bf16.mxu0 %v2366_v55 }
 0x382   : > { %2369 = vmatpush3.bf16.msra.mxu0 %v2366_v55 }
 0x383   : > { %2371 = vmatprep.subr.bf16.mxu0 %v2370_v60 }
 0x385   : > { %2150 = vmatmul.mubr.msk.f32.vlgmr.msra.gmra.mrb[2].mxu0 %vm441_vm0, %v3199_v10  ;;  %v2422_v10 = vpack.c.bf16 %v1470_v9, %v1469_v7 }
 0x386   : > { %2373 = vmatpush3.bf16.msra.mxu0 %v2370_v60  ;;  %2156 = vmatprep.mubr.msk.f32.mxu0 %vm616_vm1, %v3183_v57  ;;  %v2386_v57 = vpack.c.bf16 %v1283_v6, %v1282_v5 }
 0x387   : > { %2375 = vmatprep.subr.bf16.mxu0 %v2374_v46 }
 0x38d   : > { %2157 = vmatmul.mubr.msk.f32.vlgmr.msra.gmra.mrb[2].mxu0 %vm616_vm1, %v3189_v58  ;;  %v2426_v58 = vpack.c.bf16 %v1472_v12, %v1471_v11 }
 0x38e   : > { %2377 = vmatpush3.bf16.msra.mxu0 %v2374_v46  ;;  %2175 = vmatprep.mubr.msk.f32.mxu0 %vm441_vm0, %v3157_v8  ;;  %v2430_v8 = vpack.c.bf16 %v1474_v14, %v1473_v13 }
 0x38f   : > { %2379 = vmatprep.subr.bf16.mxu0 %v2378_v1 }
 0x392   : > { %2381 = vmatpush3.bf16.msra.mxu0 %v2378_v1 }
 0x393   : > { %2383 = vmatprep.subr.bf16.mxu0 %v2382_v4 }
 0x396   : > { %2385 = vmatpush3.bf16.msra.mxu0 %v2382_v4 }
 0x397   : > { %2387 = vmatprep.subr.bf16.mxu0 %v2386_v57 }
 0x39a   : > { %2389 = vmatpush3.bf16.msra.mxu0 %v2386_v57 }
 0x39b   : > { %2423 = vmatprep.subr.bf16.mxu0 %v2422_v10 }
 0x39d   : > { %2176 = vmatmul.mubr.msk.f32.vlgmr.msra.gmra.mrb[2].mxu0 %vm441_vm0, %v3165_v16  ;;  %v1482_v16 = vld [vmem:[#allocation11 + $0xe8] sm:$0xff] }
 0x39e   : > { %2425 = vmatpush3.bf16.msra.mxu0 %v2422_v10  ;;  %v2446_v26 = vpack.c.bf16 %v1482_v16, %v1481_v25 }
 0x39f   : > { %2427 = vmatprep.subr.bf16.mxu0 %v2426_v58 }
 0x3a2   : > { %2429 = vmatpush3.bf16.msra.mxu0 %v2426_v58 }
 0x3a3   : > { %2431 = vmatprep.subr.bf16.mxu0 %v2430_v8 }
 0x3a6   : > { %2433 = vmatpush3.bf16.msra.mxu0 %v2430_v8 }
 0x3a7   : > { %2435 = vmatprep.subr.bf16.mxu0 %v2434_v18 }
 0x3aa   : > { %2437 = vmatpush3.bf16.msra.mxu0 %v2434_v18 }
 0x3ab   : > { %2439 = vmatprep.subr.bf16.mxu0 %v2438_v21 }
 0x3ae   : > { %2441 = vmatpush3.bf16.msra.mxu0 %v2438_v21 }
 0x3af   : > { %2443 = vmatprep.subr.bf16.mxu0 %v2442_v24 }
 0x3b2   : > { %2445 = vmatpush3.bf16.msra.mxu0 %v2442_v24 }
 0x3b3   : > { %2447 = vmatprep.subr.bf16.mxu0 %v2446_v26 }
 0x3b6   : > { %2449 = vmatpush3.bf16.msra.mxu0 %v2446_v26 }
 0x3b7   : > { %2451 = vmatprep.subr.bf16.mxu0 %v2450_v32 }
 0x3ba   : > { %2453 = vmatpush3.bf16.msra.mxu0 %v2450_v32 }
 0x3bb   : > { %2454 = vmatprep.subr.bf16.mxu0 %v2831_v38 }
 0x470   : > { %v2177_v34 = vpop.f32.mrb[2].mxu0 }
 0x471   : > { %v1356_v35 = vpop.f32.mrb[3].mxu0  ;;  %v1375_v37 = vadd.f32 %v2177_v34, %v1881_v33 }
 0x472   : > { %v1374_v36 = vadd.f32 %v1881_v33, %v1356_v35 }
 0x474   : > { %2210 = vmatprep.mubr.f32.mxu1 %v1374_v36  ;;  %2245 = vmatprep.mubr.f32.mxu0 %v1374_v36 }
 0x475   : > { %2211 = vmatmul.mubr.f32.vlgmr.msra.gmra.mrb[8].mxu1 %v1375_v37  ;;  %2246 = vmatmul.mubr.f32.vlgmr.msra.gmra.mrb[4].mxu0 %v1375_v37 }
 0x476   : > { %2252 = vmatprep.mubr.msk.f32.mxu0 %vm2832_vm2, %v2833_v39  ;;  %2259 = vmatprep.mubr.msk.f32.mxu1 %vm2832_vm2, %v2833_v39 }
 0x548   : > { %v2212_v40 = vpop.f32.mrb[8].mxu1  ;;  %v2247_v41 = vpop.f32.mrb[4].mxu0 }
 0x549   : > { %v1459_v43 = vpop.f32.mrb[9].mxu1  ;;  %v1551_v44 = vpop.f32.mrb[5].mxu0 }
 0x54a   : > { %v2458_v45 = vpack.c.bf16 %v2212_v40, %v1459_v43  ;;  %v2455_v47 = vpack.c.bf16 %v2247_v41, %v1551_v44 }
 0x54c   : > { %2456 = vmatpush3.bf16.msra.mxu0 %v2455_v47  ;;  %2459 = vmatpush3.bf16.msra.mxu1 %v2458_v45 }
 0x54f   : > { %2253 = vmatmul.mubr.msk.f32.vlgmr.msra.gmra.mrb[6].mxu0 %vm616_vm1, %v1561_v48  ;;  %2260 = vmatmul.mubr.msk.f32.vlgmr.msra.gmra.mrb[10].mxu1 %vm616_vm1, %v1376_v42 }
 0x622   : > { %v1630_v49 = vpop.f32.mrb[6].mxu0  ;;  %v1702_v50 = vpop.f32.mrb[10].mxu1 }
 0x623   : > { %v1703_v51 = vadd.f32 %v1702_v50, %v1630_v49  ;;  %v2254_v52 = vpop.f32.mrb[7].mxu0  ;;  %v2261_v53 = vpop.f32.mrb[11].mxu1 }
 0x625   : > { %1706 = vst [vmem:[%s423_s14] sm:$0xf] %v1703_v51 }
 0x626   : > { %2756 = shalt.err (!%p2753_p8)
}
 0x627   : > { %s2757_s18 = scalar_lea.hbm %s3236_s16, 64  ;;  %s2761_s13 = scalar_lea.hbm %s3314_s29, 128 }
 0x628   : > { %p2758_p6 = scmp.ne.s32.totalorder %s3236_s16, %s2757_s18  ;;  %p2762_p3 = scmp.lt.u32.totalorder %s3236_s16, %s3314_s29 }
 0x629   : > { %p2763_p5 = scmp.lt.u32.totalorder %s2761_s13, %s2757_s18  ;;  %p2765_p7 = scmp.lt.u32.totalorder %s2757_s18, %s3236_s16 }
 0x62a   : > { %p2759_p10 = pnand %p2758_p6, %p3315_p4 }
 0x62b   : > { %p2764_p9 = por %p2763_p5, %p2762_p3 }
 0x62c   : > { %p2760_p11 = pneg %p2759_p10 }
 0x62d   : > { %p2766_p12 = por %p2765_p7, %p2764_p9 }
 0x62f   : > { %p2767_p1 = pnand %p2766_p12, %p2760_p11 }
 0x631   : > { %2770 = shalt.err (!%p2767_p1)
}
 0x632   : > { %2493 = dma.vmem_to_hbm [thread:$0]  (%p3315_p4), %s3238_s17, 64, %s3236_s16, %s1708_s20  }
 0x633 PF: > { %s1733_s26 = sand.u32 1, %s2809_s30   ;;  %p3316_p13 = scmp.ne.s32.totalorder %s3304_s28, 0 }
 0x634   : > { %p3317_p0 = scmp.ge.s32.totalorder %s2821_s12, 2  ;;  %s1734_s15 = scalar_lea.sflag [#allocation4], %s1733_s26 }
 0x636   : > { %p2516_p2 = pnand %p3317_p0, %p3316_p13 }
 0x638   : > { %2804 = dma.done.wait (!%p2516_p2), %s1734_s15, 64  }
 0x639   : > { %2806 = vsyncadd (!%p2516_p2), %s1734_s15, 4294967232  ;;  %p25_p8 = scmp.ge.s32.totalorder %s3058_s27, 4   ;;  %s3318_s30 = smov %s2813_s10 }
 0x63a   : > { %s3319_s10 = smov %s2817_s11  ;;  %s3320_s11 = smov %s3070_s22 }
 0x63b   : > { %s3321_s12 = smov %s3058_s27  ;;  %27 = sbr.rel (!%p25_p8) target bundleno = 11 (0xb), region = 127 }
 0x642   :  { %1739 = vsyncpa [#allocation3], 1 }
 0x643   :  { %1741 = vsyncpa [#allocation3 + $0x1], 1 }
 0x644   :  { %1742 = vsyncpa [#allocation6], 1 }
 0x645   :  { %1743 = vsyncpa [#allocation9], 1 }
 0x646   :  { %1744 = vsyncpa [#allocation12], 1 }
 0x647   :  { %1745 = vsyncpa [#allocation4], 1 }
 0x648   :  { %1747 = vsyncpa [#allocation4 + $0x1], 1 }

</bundles_post_ra>
